<compile_context>
chip_gen: v5e
topology: v5e:2x2
jax: 0.10.0
libtpu: 0.0.40
codegen_flags: <defaults>
</compile_context>

<pallas_src>
import functools
import math

import jax
import jax.numpy as jnp
from jax.experimental import pallas as pl
from jax.experimental.pallas import tpu as pltpu


def _attn_kernel(xq_ref, xkv_ref, wq_ref, wk_ref, wv_ref, o_ref,
                 q_scr, m_scr, l_scr, acc_scr, *, scale, compute_dtype):
    ki = pl.program_id(2)

    # ---- init for this (batch, q-tile): project q once, reset accumulators ----
    @pl.when(ki == 0)
    def _():
        xq = xq_ref[0]                                        # (tq, dim_q)
        q = jnp.dot(xq, wq_ref[...],
                    preferred_element_type=jnp.float32)       # (tq, dim_k) f32
        q_scr[...] = (q * scale).astype(q_scr.dtype)          # fold 1/sqrt(dk) into q
        m_scr[...] = jnp.full_like(m_scr, -jnp.inf)
        l_scr[...] = jnp.zeros_like(l_scr)
        acc_scr[...] = jnp.zeros_like(acc_scr)

    # ---- project this k/v tile (native dtype in, f32 accumulate) ----
    xkv = xkv_ref[0]                                          # (tk, dim_q)
    k = jnp.dot(xkv, wk_ref[...],
                preferred_element_type=jnp.float32).astype(compute_dtype)
    v = jnp.dot(xkv, wv_ref[...],
                preferred_element_type=jnp.float32).astype(compute_dtype)

    # ---- scores + online softmax update ----
    s = jnp.dot(q_scr[...], k.T,
                preferred_element_type=jnp.float32)           # (tq, tk) f32
    m_new = jnp.maximum(m_scr[...], s.max(axis=-1, keepdims=True))
    alpha = jnp.exp(m_scr[...] - m_new)
    p = jnp.exp(s - m_new)
    l_scr[...] = alpha * l_scr[...] + p.sum(axis=-1, keepdims=True)
    acc_scr[...] = alpha * acc_scr[...] + jnp.dot(
        p.astype(compute_dtype), v, preferred_element_type=jnp.float32)
    m_scr[...] = m_new

    # ---- finalize: normalize and write the output tile ----
    @pl.when(ki == pl.num_programs(2) - 1)
    def _():
        o_ref[0] = (acc_scr[...] / l_scr[...]).astype(o_ref.dtype)


def _pick_block(n):
    """Largest MXU-friendly tile that evenly divides n, else the full extent."""
    for cand in (512, 256, 128):
        if n % cand == 0:
            return cand
    return n


def self_attention(x, wq, wk, wv, *, block_q=None, block_kv=None):
    """x: (batch, n, dim_q); wq/wk: (dim_q, dim_k); wv: (dim_q, dim_v)."""
    batch, n, dim_q = x.shape
    dim_k = wq.shape[1]
    dim_v = wv.shape[1]
    scale = 1.0 / math.sqrt(dim_k)
    compute_dtype = x.dtype

    if block_q is None:
        block_q = _pick_block(n)
    if block_kv is None:
        block_kv = _pick_block(n)
    assert n % block_q == 0 and n % block_kv == 0, "seq must divide block sizes"
    # NOTE: for toy dims < 128 the blocks equal the full array dims, which
    # satisfies the (8,128) tiling rule; real models should keep dim_k/dim_v
    # (lane axis) a multiple of 128 for unmasked stores.

    kernel = functools.partial(_attn_kernel, scale=scale,
                               compute_dtype=compute_dtype)

    grid = (batch, n // block_q, n // block_kv)

    out = pl.pallas_call(
        kernel,
        out_shape=jax.ShapeDtypeStruct((batch, n, dim_v), x.dtype),
        grid_spec=pltpu.PrefetchScalarGridSpec(
            num_scalar_prefetch=0,
            grid=grid,
            in_specs=[
                # x, query view: indexed by (b, qi)
                pl.BlockSpec((1, block_q, dim_q), lambda b, qi, ki: (b, qi, 0)),
                # x, key/value view: indexed by (b, ki)
                pl.BlockSpec((1, block_kv, dim_q), lambda b, qi, ki: (b, ki, 0)),
                # projection weights: resident, constant across the grid
                pl.BlockSpec((dim_q, dim_k), lambda b, qi, ki: (0, 0)),   # Wq
                pl.BlockSpec((dim_q, dim_k), lambda b, qi, ki: (0, 0)),   # Wk
                pl.BlockSpec((dim_q, dim_v), lambda b, qi, ki: (0, 0)),   # Wv
            ],
            out_specs=pl.BlockSpec((1, block_q, dim_v),
                                   lambda b, qi, ki: (b, qi, 0)),
            scratch_shapes=[
                pltpu.VMEM((block_q, dim_k), compute_dtype),   # scaled q tile
                pltpu.VMEM((block_q, 1), jnp.float32),         # running max m
                pltpu.VMEM((block_q, 1), jnp.float32),         # running sum l
                pltpu.VMEM((block_q, dim_v), jnp.float32),     # output accumulator
            ],
        ),
        compiler_params=pltpu.CompilerParams(
            dimension_semantics=("parallel", "parallel", "arbitrary"),
            vmem_limit_bytes=64 * 1024 * 1024,
        ),
    )(x, x, wq, wk, wv)

    return out


def _reference(x, wq, wk, wv):
    q = jnp.einsum("bnd,dk->bnk", x, wq)
    k = jnp.einsum("bnd,dk->bnk", x, wk)
    v = jnp.einsum("bnd,dv->bnv", x, wv)
    dist = jnp.einsum("bnk,bmk->bnm", q, k) * (1.0 / math.sqrt(wq.shape[1]))
    dist = jax.nn.softmax(dist, axis=-1)
    return jnp.einsum("bnm,bmv->bnv", dist, v)


if __name__ == "__main__":
    batch, n, dim_q, dim_k, dim_v = 2, 8, 32, 32, 32

    key = jax.random.PRNGKey(0)
    kx, kq, kk, kv = jax.random.split(key, 4)

    x = jax.random.normal(kx, (batch, n, dim_q), dtype=jnp.float32)

    # nn.Linear(dim_q, *, bias=False) init: uniform(-1/sqrt(dim_q), 1/sqrt(dim_q))
    lim = 1.0 / math.sqrt(dim_q)
    wq = jax.random.uniform(kq, (dim_q, dim_k), jnp.float32, -lim, lim)
    wk = jax.random.uniform(kk, (dim_q, dim_k), jnp.float32, -lim, lim)
    wv = jax.random.uniform(kv, (dim_q, dim_v), jnp.float32, -lim, lim)

    out = self_attention(x, wq, wk, wv)
    out = jax.block_until_ready(out)

    ref = _reference(x, wq, wk, wv)
    assert out.shape == (batch, n, dim_v)
    assert jnp.allclose(out, ref, atol=1e-5, rtol=1e-5), "mismatch vs reference"

    print("KERNEL_OK")
</pallas_src>

<mosaic_0001>
module attributes {stable_mosaic.version = 11 : i64} {
  func.func @_attn_kernel(%arg0: i32, %arg1: i32, %arg2: i32, %arg3: memref<1x8x32xf32, #tpu.memory_space<vmem>>, %arg4: memref<1x8x32xf32, #tpu.memory_space<vmem>>, %arg5: memref<32x32xf32, #tpu.memory_space<vmem>>, %arg6: memref<32x32xf32, #tpu.memory_space<vmem>>, %arg7: memref<32x32xf32, #tpu.memory_space<vmem>>, %arg8: memref<1x8x32xf32, #tpu.memory_space<vmem>>, %arg9: memref<8x32xf32, #tpu.memory_space<vmem>>, %arg10: memref<8x1xf32, #tpu.memory_space<vmem>>, %arg11: memref<8x1xf32, #tpu.memory_space<vmem>>, %arg12: memref<8x32xf32, #tpu.memory_space<vmem>>) attributes {dimension_semantics = [#tpu.dimension_semantics<parallel>, #tpu.dimension_semantics<parallel>, #tpu.dimension_semantics<arbitrary>], iteration_bounds = array<i64: 2, 1, 1>, scalar_prefetch = 0 : i64, scratch_operands = 4 : i64, tpu.core_type = #tpu.core_type<tc>, window_params = [{transform_indices = @transform_0, window_bounds = array<i64: 1, 8, 32>}, {transform_indices = @transform_1, window_bounds = array<i64: 1, 8, 32>}, {pipeline_mode = #tpu.pipeline_mode<synchronous>, transform_indices = @transform_2, window_bounds = array<i64: 32, 32>}, {pipeline_mode = #tpu.pipeline_mode<synchronous>, transform_indices = @transform_3, window_bounds = array<i64: 32, 32>}, {pipeline_mode = #tpu.pipeline_mode<synchronous>, transform_indices = @transform_4, window_bounds = array<i64: 32, 32>}, {transform_indices = @transform_5, window_bounds = array<i64: 1, 8, 32>}]} {
    %c0_i32 = arith.constant 0 : i32
    %0 = arith.cmpi eq, %arg2, %c0_i32 : i32
    %1 = arith.extui %0 : i1 to i32
    %c0_i32_0 = arith.constant 0 : i32
    %2 = arith.cmpi ne, %1, %c0_i32_0 : i32
    scf.if %2 {
      %c0_30 = arith.constant 0 : index
      %c0_31 = arith.constant 0 : index
      %c0_32 = arith.constant 0 : index
      %38 = vector.load %arg3[%c0_30, %c0_31, %c0_32] : memref<1x8x32xf32, #tpu.memory_space<vmem>>, vector<1x8x32xf32>
      %39 = vector.shape_cast %38 : vector<1x8x32xf32> to vector<8x32xf32>
      %c0_33 = arith.constant 0 : index
      %c0_34 = arith.constant 0 : index
      %40 = vector.load %arg5[%c0_33, %c0_34] : memref<32x32xf32, #tpu.memory_space<vmem>>, vector<32x32xf32>
      %cst_35 = arith.constant dense<0.000000e+00> : vector<8x32xf32>
      %41 = tpu.matmul %39, %40, %cst_35 {dimension_numbers = #tpu.dot_dimension_numbers<[1], [0], [0], [1], [0, 0, 1, 1], [], []>} : vector<8x32xf32>, vector<32x32xf32>, vector<8x32xf32> -> vector<8x32xf32>
      %cst_36 = arith.constant 0.176776692 : f32
      %42 = vector.broadcast %cst_36 : f32 to vector<8x32xf32>
      %43 = arith.mulf %41, %42 : vector<8x32xf32>
      %c0_37 = arith.constant 0 : index
      %c0_38 = arith.constant 0 : index
      %44 = vector.load %arg9[%c0_37, %c0_38] : memref<8x32xf32, #tpu.memory_space<vmem>>, vector<8x32xf32>
      tpu.vector_store %arg9[%c0_37, %c0_38], %43 {strides = array<i32>} : memref<8x32xf32, #tpu.memory_space<vmem>>, vector<8x32xf32>,
      %cst_39 = arith.constant 0xFF800000 : f32
      %45 = vector.broadcast %cst_39 : f32 to vector<8x1xf32>
      %c0_40 = arith.constant 0 : index
      %c0_41 = arith.constant 0 : index
      %46 = vector.load %arg10[%c0_40, %c0_41] : memref<8x1xf32, #tpu.memory_space<vmem>>, vector<8x1xf32>
      tpu.vector_store %arg10[%c0_40, %c0_41], %45 {strides = array<i32>} : memref<8x1xf32, #tpu.memory_space<vmem>>, vector<8x1xf32>,
      %cst_42 = arith.constant 0.000000e+00 : f32
      %47 = vector.broadcast %cst_42 : f32 to vector<8x1xf32>
      %c0_43 = arith.constant 0 : index
      %c0_44 = arith.constant 0 : index
      %48 = vector.load %arg11[%c0_43, %c0_44] : memref<8x1xf32, #tpu.memory_space<vmem>>, vector<8x1xf32>
      tpu.vector_store %arg11[%c0_43, %c0_44], %47 {strides = array<i32>} : memref<8x1xf32, #tpu.memory_space<vmem>>, vector<8x1xf32>,
      %cst_45 = arith.constant 0.000000e+00 : f32
      %49 = vector.broadcast %cst_45 : f32 to vector<8x32xf32>
      %c0_46 = arith.constant 0 : index
      %c0_47 = arith.constant 0 : index
      %50 = vector.load %arg12[%c0_46, %c0_47] : memref<8x32xf32, #tpu.memory_space<vmem>>, vector<8x32xf32>
      tpu.vector_store %arg12[%c0_46, %c0_47], %49 {strides = array<i32>} : memref<8x32xf32, #tpu.memory_space<vmem>>, vector<8x32xf32>,
    } else {
    }
    %c0 = arith.constant 0 : index
    %c0_1 = arith.constant 0 : index
    %c0_2 = arith.constant 0 : index
    %3 = vector.load %arg4[%c0, %c0_1, %c0_2] : memref<1x8x32xf32, #tpu.memory_space<vmem>>, vector<1x8x32xf32>
    %4 = vector.shape_cast %3 : vector<1x8x32xf32> to vector<8x32xf32>
    %c0_3 = arith.constant 0 : index
    %c0_4 = arith.constant 0 : index
    %5 = vector.load %arg6[%c0_3, %c0_4] : memref<32x32xf32, #tpu.memory_space<vmem>>, vector<32x32xf32>
    %cst = arith.constant dense<0.000000e+00> : vector<8x32xf32>
    %6 = tpu.matmul %4, %5, %cst {dimension_numbers = #tpu.dot_dimension_numbers<[1], [0], [0], [1], [0, 0, 1, 1], [], []>} : vector<8x32xf32>, vector<32x32xf32>, vector<8x32xf32> -> vector<8x32xf32>
    %c0_5 = arith.constant 0 : index
    %c0_6 = arith.constant 0 : index
    %7 = vector.load %arg7[%c0_5, %c0_6] : memref<32x32xf32, #tpu.memory_space<vmem>>, vector<32x32xf32>
    %cst_7 = arith.constant dense<0.000000e+00> : vector<8x32xf32>
    %8 = tpu.matmul %4, %7, %cst_7 {dimension_numbers = #tpu.dot_dimension_numbers<[1], [0], [0], [1], [0, 0, 1, 1], [], []>} : vector<8x32xf32>, vector<32x32xf32>, vector<8x32xf32> -> vector<8x32xf32>
    %c0_8 = arith.constant 0 : index
    %c0_9 = arith.constant 0 : index
    %9 = vector.load %arg9[%c0_8, %c0_9] : memref<8x32xf32, #tpu.memory_space<vmem>>, vector<8x32xf32>
    %10 = tpu.transpose %6, [1, 0] : vector<8x32xf32> -> vector<32x8xf32>
    %cst_10 = arith.constant dense<0.000000e+00> : vector<8x8xf32>
    %11 = tpu.matmul %9, %10, %cst_10 {dimension_numbers = #tpu.dot_dimension_numbers<[1], [0], [0], [1], [0, 0, 1, 1], [], []>} : vector<8x32xf32>, vector<32x8xf32>, vector<8x8xf32> -> vector<8x8xf32>
    %c0_11 = arith.constant 0 : index
    %c0_12 = arith.constant 0 : index
    %12 = vector.load %arg10[%c0_11, %c0_12] : memref<8x1xf32, #tpu.memory_space<vmem>>, vector<8x1xf32>
    %cst_13 = arith.constant dense<0xFF800000> : vector<8xf32>
    %13 = vector.multi_reduction <maximumf>, %11, %cst_13 [1] : vector<8x8xf32> to vector<8xf32>
    %14 = vector.shape_cast %13 : vector<8xf32> to vector<8x1xf32>
    %15 = arith.maximumf %12, %14 : vector<8x1xf32>
    %c0_14 = arith.constant 0 : index
    %c0_15 = arith.constant 0 : index
    %16 = vector.load %arg10[%c0_14, %c0_15] : memref<8x1xf32, #tpu.memory_space<vmem>>, vector<8x1xf32>
    %17 = arith.subf %16, %15 : vector<8x1xf32>
    %18 = math.exp %17 : vector<8x1xf32>
    %19 = vector.broadcast %15 : vector<8x1xf32> to vector<8x8xf32>
    %20 = arith.subf %11, %19 : vector<8x8xf32>
    %21 = math.exp %20 : vector<8x8xf32>
    %c0_16 = arith.constant 0 : index
    %c0_17 = arith.constant 0 : index
    %22 = vector.load %arg11[%c0_16, %c0_17] : memref<8x1xf32, #tpu.memory_space<vmem>>, vector<8x1xf32>
    %23 = arith.mulf %18, %22 : vector<8x1xf32>
    %cst_18 = arith.constant dense<0.000000e+00> : vector<8xf32>
    %24 = vector.multi_reduction <add>, %21, %cst_18 [1] : vector<8x8xf32> to vector<8xf32>
    %25 = vector.shape_cast %24 : vector<8xf32> to vector<8x1xf32>
    %26 = arith.addf %23, %25 : vector<8x1xf32>
    %c0_19 = arith.constant 0 : index
    %c0_20 = arith.constant 0 : index
    %27 = vector.load %arg11[%c0_19, %c0_20] : memref<8x1xf32, #tpu.memory_space<vmem>>, vector<8x1xf32>
    tpu.vector_store %arg11[%c0_19, %c0_20], %26 {strides = array<i32>} : memref<8x1xf32, #tpu.memory_space<vmem>>, vector<8x1xf32>,
    %c0_21 = arith.constant 0 : index
    %c0_22 = arith.constant 0 : index
    %28 = vector.load %arg12[%c0_21, %c0_22] : memref<8x32xf32, #tpu.memory_space<vmem>>, vector<8x32xf32>
    %29 = vector.broadcast %18 : vector<8x1xf32> to vector<8x32xf32>
    %30 = arith.mulf %29, %28 : vector<8x32xf32>
    %cst_23 = arith.constant dense<0.000000e+00> : vector<8x32xf32>
    %31 = tpu.matmul %21, %8, %cst_23 {dimension_numbers = #tpu.dot_dimension_numbers<[1], [0], [0], [1], [0, 0, 1, 1], [], []>} : vector<8x8xf32>, vector<8x32xf32>, vector<8x32xf32> -> vector<8x32xf32>
    %32 = arith.addf %30, %31 : vector<8x32xf32>
    %c0_24 = arith.constant 0 : index
    %c0_25 = arith.constant 0 : index
    %33 = vector.load %arg12[%c0_24, %c0_25] : memref<8x32xf32, #tpu.memory_space<vmem>>, vector<8x32xf32>
    tpu.vector_store %arg12[%c0_24, %c0_25], %32 {strides = array<i32>} : memref<8x32xf32, #tpu.memory_space<vmem>>, vector<8x32xf32>,
    %c0_26 = arith.constant 0 : index
    %c0_27 = arith.constant 0 : index
    %34 = vector.load %arg10[%c0_26, %c0_27] : memref<8x1xf32, #tpu.memory_space<vmem>>, vector<8x1xf32>
    tpu.vector_store %arg10[%c0_26, %c0_27], %15 {strides = array<i32>} : memref<8x1xf32, #tpu.memory_space<vmem>>, vector<8x1xf32>,
    %c0_i32_28 = arith.constant 0 : i32
    %35 = arith.cmpi eq, %arg2, %c0_i32_28 : i32
    %36 = arith.extui %35 : i1 to i32
    %c0_i32_29 = arith.constant 0 : i32
    %37 = arith.cmpi ne, %36, %c0_i32_29 : i32
    scf.if %37 {
      %c0_30 = arith.constant 0 : index
      %c0_31 = arith.constant 0 : index
      %38 = vector.load %arg12[%c0_30, %c0_31] : memref<8x32xf32, #tpu.memory_space<vmem>>, vector<8x32xf32>
      %c0_32 = arith.constant 0 : index
      %c0_33 = arith.constant 0 : index
      %39 = vector.load %arg11[%c0_32, %c0_33] : memref<8x1xf32, #tpu.memory_space<vmem>>, vector<8x1xf32>
      %40 = vector.broadcast %39 : vector<8x1xf32> to vector<8x32xf32>
      %41 = arith.divf %38, %40 : vector<8x32xf32>
      %c0_34 = arith.constant 0 : index
      %c0_35 = arith.constant 0 : index
      %c0_36 = arith.constant 0 : index
      %42 = vector.load %arg8[%c0_34, %c0_35, %c0_36] : memref<1x8x32xf32, #tpu.memory_space<vmem>>, vector<1x8x32xf32>
      %43 = vector.shape_cast %42 : vector<1x8x32xf32> to vector<8x32xf32>
      %44 = vector.shape_cast %41 : vector<8x32xf32> to vector<1x8x32xf32>
      tpu.vector_store %arg8[%c0_34, %c0_35, %c0_36], %44 {strides = array<i32>} : memref<1x8x32xf32, #tpu.memory_space<vmem>>, vector<1x8x32xf32>,
    } else {
    }
    return
  }
  func.func @transform_0(%arg0: i32, %arg1: i32, %arg2: i32) -> (i32, i32, i32) {
    %c0_i32 = arith.constant 0 : i32
    %c0_i32_0 = arith.constant 0 : i32
    return %arg0, %arg1, %c0_i32 : i32, i32, i32
  }
  func.func @transform_1(%arg0: i32, %arg1: i32, %arg2: i32) -> (i32, i32, i32) {
    %c0_i32 = arith.constant 0 : i32
    %c0_i32_0 = arith.constant 0 : i32
    return %arg0, %arg2, %c0_i32 : i32, i32, i32
  }
  func.func @transform_2(%arg0: i32, %arg1: i32, %arg2: i32) -> (i32, i32) {
    %c0_i32 = arith.constant 0 : i32
    %c0_i32_0 = arith.constant 0 : i32
    %c0_i32_1 = arith.constant 0 : i32
    return %c0_i32, %c0_i32_0 : i32, i32
  }
  func.func @transform_3(%arg0: i32, %arg1: i32, %arg2: i32) -> (i32, i32) {
    %c0_i32 = arith.constant 0 : i32
    %c0_i32_0 = arith.constant 0 : i32
    %c0_i32_1 = arith.constant 0 : i32
    return %c0_i32, %c0_i32_0 : i32, i32
  }
  func.func @transform_4(%arg0: i32, %arg1: i32, %arg2: i32) -> (i32, i32) {
    %c0_i32 = arith.constant 0 : i32
    %c0_i32_0 = arith.constant 0 : i32
    %c0_i32_1 = arith.constant 0 : i32
    return %c0_i32, %c0_i32_0 : i32, i32
  }
  func.func @transform_5(%arg0: i32, %arg1: i32, %arg2: i32) -> (i32, i32, i32) {
    %c0_i32 = arith.constant 0 : i32
    %c0_i32_0 = arith.constant 0 : i32
    return %arg0, %arg1, %c0_i32 : i32, i32, i32
  }
}

</mosaic_0001>

<bundles_post_ra>
// kernel: tpu_custom_call.1
= control target key start
LH: loop header
LB: loop body
LE: loop exit
PB: predicated region body
PF: predicated region fallthrough
CT: control target
= control target key end

     0   :  { %s1329_s0 = inlined_call_operand.hbm [shape: f32[2,8,32], index: 0, kind: input, shape index: {}]   ;;  %s1330_s1 = inlined_call_operand.hbm [shape: f32[2,8,32], index: 1, kind: input, shape index: {}]   ;;  %s1331_s2 = inlined_call_operand.hbm [shape: f32[32,32], index: 2, kind: input, shape index: {}]   ;;  %s1332_s3 = inlined_call_operand.hbm [shape: f32[32,32], index: 3, kind: input, shape index: {}]   ;;  %s1333_s4 = inlined_call_operand.hbm [shape: f32[32,32], index: 4, kind: input, shape index: {}]   ;;  %s1334_s5 = inlined_call_operand.hbm [shape: f32[2,8,32], index: 5, kind: output, shape index: {}]  }
   0x1   :  { %1337 = sst [smem:[#allocation24_spill]] %s1331_s2 }
   0x2   :  { %1338 = sst [smem:[#allocation25_spill]] %s1332_s3 }
   0x3   :  { %1339 = sst [smem:[#allocation26_spill]] %s1333_s4 }
   0x4   :  { %10 = vsyncpa [#allocation7], 0 }
   0x5   :  { %12 = vsyncpa [#allocation7 + $0x1], 0 }
   0x6   :  { %13 = vsyncpa [#allocation10], 0 }
   0x7   :  { %15 = vsyncpa [#allocation10 + $0x1], 0 }
   0x8   :  { %16 = vsyncpa [#allocation13], 0 }
   0x9   :  { %17 = vsyncpa [#allocation8], 0 }
   0xa   :  { %19 = vsyncpa [#allocation8 + $0x1], 0  ;;  %s1136_s18 = smov 0   ;;  %s1138_s19 = smov 0  }
   0xb   :  { %s1140_s20 = smov 0   ;;  %s1142_s21 = smov 0  }
   0xc   :  { %s1144_s22 = smov 0   ;;  %s1146_s23 = smov 0  }
   0xd LB: > { %1340 = sst [smem:[#allocation21_spill]] %s1092_s22  ;;  %s1167_s24 = sadd.s32 4294967295, %s1096_s23   ;;  %s1096_s23 = sphi %s1146_s23, %s25_s23   ;;  %s1092_s22 = sphi %s1144_s22, %s1354_s22   ;;  %s1088_s21 = sphi %s1142_s21, %s1353_s21   ;;  %s1084_s20 = sphi %s1140_s20, %s1357_s20   ;;  %s1080_s19 = sphi %s1138_s19, %s1356_s19   ;;  %s1076_s18 = sphi %s1136_s18, %s1355_s18  }
   0xe   : > { %p714_p0 = scmp.ge.s32.totalorder %s1096_s23, 1  ;;  %p67_p1 = scmp.eq.s32.totalorder %s1167_s24, 0 }
   0xf   : > { %p196_p2 = scmp.lt.s32.totalorder %s1096_s23, 3  ;;  %s1341_s2 = sld [smem:[#allocation24_spill]] }
  0x10   : > { %s1098_s29 = smov [#allocation11]   ;;  %p718_p6 = scmp.ge.s32.totalorder %s1096_s23, 2 }
  0x11   : > { %p1175_p3 = pnand %p714_p0, %p196_p2  ;;  %s209_s30 = sshll.u32 %s1098_s29, 4  ;;  %s210_s30 = int_to_ptr.vmem [resolvable:$true] %s209_s30 }
  0x12   : > { %s1344_s3 = sld [smem:[#allocation25_spill]]  ;;  %s1099_s10 = smov 128  }
  0x13   : > { %p758_p4 = pneg %p1175_p3  ;;  %s1100_s11 = smov 8  }
  0x14   : > { %s1101_s12 = smov [#allocation12]   ;;  %s1345_s4 = sld [smem:[#allocation26_spill]] }
  0x15   : > { %s207_s27 = sshll.u32 %s1341_s2, 4  ;;  %p1183_p5 = pnand %p758_p4, %p67_p1  ;;  %s208_s27 = int_to_ptr.hbm [resolvable:$true] %s207_s27 }
  0x16   : > { %s223_s13 = sshll.u32 %s1101_s12, 4  ;;  %s1102_s17 = smov [#allocation14]   ;;  %s224_s13 = int_to_ptr.vmem [resolvable:$true] %s223_s13 }
  0x17   : > { %761 = dma.hbm_to_vmem [thread:$0]  (!%p1183_p5), %s208_s27, 512, %s210_s30, [#allocation10], %s1099_s10, %s1099_s10, %s1100_s11  }
  0x18   : > { %s221_s9 = sshll.u32 %s1344_s3, 4  ;;  %s237_s25 = sshll.u32 %s1102_s17, 4  ;;  %s222_s9 = int_to_ptr.hbm [resolvable:$true] %s221_s9  ;;  %s238_s25 = int_to_ptr.vmem [resolvable:$true] %s237_s25 }
  0x19   : > { %764 = dma.hbm_to_vmem [thread:$0]  (!%p1183_p5), %s222_s9, 512, %s224_s13, [#allocation13], %s1099_s10, %s1099_s10, %s1100_s11  }
  0x1a   : > { %s235_s16 = sshll.u32 %s1345_s4, 4  ;;  %s713_s26 = sadd.s32 4294967294, %s1096_s23   ;;  %s236_s16 = int_to_ptr.hbm [resolvable:$true] %s235_s16 }
  0x1b   : > { %767 = dma.hbm_to_vmem [thread:$0]  (!%p1183_p5), %s236_s16, 512, %s238_s25, [#allocation13], %s1099_s10, %s1099_s10, %s1100_s11  }
  0x1c   : > { %s44_s27 = sadd.s32 1, %s1092_s22  ;;  %s53_s29 = sadd.s32 1, %s1084_s20 }
  0x1d   : > { %p46_p7 = scmp.ge.s32.totalorder %s44_s27, 2  ;;  %p60_p8 = scmp.ne.s32.totalorder %s1084_s20, %s1080_s19 }
  0x1e   : > { %p61_p9 = scmp.eq.s32.totalorder %s1096_s23, 0  ;;  %p66_p10 = scmp.ne.s32.totalorder %s1080_s19, %s1076_s18 }
  0x1f   : > { %s1359_s27 = smov (%p46_p7, %s44_s27), 0  ;;  %p183_p13 = scmp.eq.s32.totalorder %s1167_s24, 1 }
  0x20   : > { %1346 = sst [smem:[#allocation22_spill]] %s1359_s27  ;;  %p1210_p11 = por %p61_p9, %p60_p8 }
  0x21   : > { %p1216_p12 = por %p67_p1, %p66_p10  ;;  %s48_s7 = ssub.s32 %s1092_s22, %s1359_s27 }
  0x22   : > { %p51_p0 = scmp.eq.s32.totalorder %s48_s7, 0  ;;  %p189_p2 = scmp.eq.s32.totalorder %s713_s26, 1 }
  0x23   : > { %p1223_p4 = por %p183_p13, %p60_p8  ;;  %p782_p5 = scmp.lt.s32.totalorder %s1096_s23, 2 }
  0x24   : > { %s1229_s9 = scalar_select %p51_p0, %s1084_s20, %s53_s29  }
  0x25   : > { %p1231_p7 = por %p189_p2, %p66_p10  ;;  %s251_s11 = sand.u32 1, %s1084_s20  }
  0x26   : > { %1350 = sst [smem:[#allocation23_spill]] %s1229_s9  ;;  %s719_s12 = sshll.u32 %s251_s11, 3 }
  0x27   : > { %s720_s13 = sshll.u32 %s1092_s22, 3  ;;  %s255_s17 = scalar_lea.vmem [#allocation6], %s719_s12 }
  0x28   : > { %s260_s16 = scalar_lea.hbm %s1329_s0, %s720_s13  ;;  %s264_s25 = sshll.u32 %s255_s17, 4  ;;  %s265_s25 = int_to_ptr.vmem [resolvable:$true] %s264_s25 }
  0x29   : > { %s262_s26 = sshll.u32 %s260_s16, 4  ;;  %p769_p8 = pnand %p782_p5, %p1210_p11  ;;  %s263_s26 = int_to_ptr.hbm [resolvable:$true] %s262_s26 }
  0x2a   : > { %s280_s2 = scalar_lea.hbm %s1330_s1, %s720_s13  ;;  %s271_s3 = sand.u32 1, %s1096_s23  }
  0x2b   : > { %s252_s4 = scalar_lea.sflag [#allocation7], %s251_s11  ;;  %s282_s27 = sshll.u32 %s280_s2, 4  ;;  %s283_s27 = int_to_ptr.hbm [resolvable:$true] %s282_s27 }
  0x2c   : > { %771 = dma.hbm_to_vmem [thread:$0]  (!%p769_p8), %s263_s26, 128, %s265_s25, %s252_s4  }
  0x2d   : > { %s275_s22 = scalar_lea.vmem [#allocation9], %s719_s12  ;;  %s272_s14 = scalar_lea.sflag [#allocation10], %s271_s3 }
  0x2e   : > { %s284_s9 = sshll.u32 %s275_s22, 4  ;;  %293 = sbr.rel (%p1175_p3) target bundleno = 844 (0x34c), region = 40  ;;  %s285_s9 = int_to_ptr.vmem [resolvable:$true] %s284_s9 }
  0x2f   : > { %774 = dma.hbm_to_vmem [thread:$0]  (!%p769_p8), %s283_s27, 128, %s285_s9, %s272_s14  }
  0x30   : > { %s1249_s30 = sand.u32 (!%p1175_p3), 1, %s1080_s19  }
  0x31   : > { %s1252_s13 = sshll.u32 (!%p1175_p3), %s1249_s30, 3  ;;  %s296_s4 = scalar_lea.sflag (!%p1175_p3), [#allocation7], %s1249_s30 }
  0x32   : > { %s299_s2 = scalar_lea.vmem (!%p1175_p3), [#allocation6], %s1252_s13 }
  0x33   : > { %1055 = dma.done.wait (%p1216_p12), %s296_s4, 128  }
  0x34   : > { %1057 = vsyncadd (%p1216_p12), %s296_s4, 4294967168  ;;  %s305_s3 = sand.u32 1, %s1167_s24   ;;  %s309_s28 = scalar_lea.vmem [#allocation9], %s1252_s13 }
  0x35   : > { %s306_s22 = scalar_lea.sflag [#allocation10], %s305_s3 }
  0x36   : > { %1059 = dma.done.wait (%p1216_p12), %s306_s22, 128  }
  0x37   : > { %1061 = vsyncadd (%p1216_p12), %s306_s22, 4294967168 }
  0x38   : > { %1063 = dma.done.wait (%p67_p1), [#allocation10], 512  }
  0x39   : > { %1065 = vsyncadd (%p67_p1), [#allocation10], 4294966784 }
  0x3a   : > { %1067 = dma.done.wait (%p67_p1), [#allocation13], 1024  }
  0x3b   : > { %1069 = vsyncadd (%p67_p1), [#allocation13], 4294966272  ;;  %v365_v0 = vld [vmem:[#allocation11 + $0x18] sm:$0xff]  ;;  %v364_v1 = vld [vmem:[#allocation11 + $0x10] sm:$0xff]  ;;  %vm366_vm0 = vcmask 261120   ;;  %vm392_vm1 = vcmask 7168  }
  0x3c   : > { %382 = vmatpush.msra.mxu0 %v365_v0  ;;  %v400_v2 = vld [vmem:[#allocation12 + $0x18] sm:$0xff]  ;;  %v363_v3 = vld [vmem:[#allocation11 + $0x8] sm:$0xff]  ;;  %v399_v4 = vld [vmem:[#allocation12 + $0x10] sm:$0xff]  ;;  %v1103_v16 = vmov -inf   ;;  %vm477_vm2 = vcmask 64512   ;;  %v1104_v21 = vmov 0  }
  0x3d   : > { %417 = vmatpush.msra.mxu1 %v400_v2  ;;  %v398_v5 = vld [vmem:[#allocation12 + $0x8] sm:$0xff]  ;;  %v362_v6 = vld [vmem:[#allocation11] sm:$0xff]  ;;  %v396_v9 = vld [vmem:[%s309_s28] sm:$0xff]  ;;  %393 = vst.msk [vmem:[#allocation3] sm:$0xff] %vm392_vm1, %v1103_v16  ;;  %843 = vset.pattern.permute.xlu0 %v1104_v21  ;;  %v1105_v22 = vmov 0.0   ;;  %s737_s24 = sshll.u32 %s1088_s21, 3 }
  0x3e   : > { %383 = vmatpush.msra.mxu0 %v364_v1  ;;  %v361_v7 = vld [vmem:[%s299_s2] sm:$0xff]  ;;  %v428_v14 = vld [vmem:[#allocation14 + $0x18] sm:$0xff]  ;;  %v427_v15 = vld [vmem:[#allocation14 + $0x10] sm:$0xff]  ;;  %845 = vset.pattern.permute.xlu2 %v1104_v21  ;;  %395 = vst.msk [vmem:[#allocation5] sm:$0xff] %vm366_vm0, %v1105_v22  ;;  %s572_s9 = scalar_lea.hbm %s1334_s5, %s737_s24  ;;  %s356_s11 = scalar_lea.vmem [#allocation15], %s1252_s13 }
  0x3f   : > { %418 = vmatpush.msra.mxu1 %v399_v4  ;;  %v397_v8 = vld [vmem:[#allocation12] sm:$0xff]  ;;  %441 = vmatpush.msra.mxu2 %v428_v14  ;;  %v426_v17 = vld [vmem:[#allocation14 + $0x8] sm:$0xff]  ;;  %394 = vst.msk [vmem:[#allocation4] sm:$0xff] %vm392_vm1, %v1105_v22  ;;  %s574_s12 = sshll.u32 %s356_s11, 4  ;;  %s576_s15 = sshll.u32 %s572_s9, 4  ;;  %s575_s12 = int_to_ptr.vmem [resolvable:$true] %s574_s12  ;;  %s577_s15 = int_to_ptr.hbm [resolvable:$true] %s576_s15 }
  0x40   : > { %384 = vmatpush.msra.mxu0 %v363_v3  ;;  %v425_v18 = vld [vmem:[#allocation14] sm:$0xff]  ;;  %844 = vset.pattern.permute.xlu1 %v1104_v21  ;;  %s561_s21 = scalar_lea.sflag [#allocation8], %s1249_s30  ;;  %s1016_s16 = sshra.s32 %s577_s15, 4  ;;  %s1017_s16 = int_to_ptr.hbm [resolvable:$true] %s1016_s16 }
  0x41   : > { %419 = vmatpush.msra.mxu1 %v398_v5  ;;  %442 = vmatpush.msra.mxu2 %v427_v15  ;;  %s1018_s17 = scalar_lea.hbm %s1017_s16, 8  ;;  %s1022_s29 = scalar_lea.hbm %s1334_s5, 16 }
  0x42   : > { %385 = vmatpush.msra.mxu0 %v362_v6  ;;  %p1019_p1 = scmp.ne.s32.totalorder %s1017_s16, %s1018_s17  ;;  %p1023_p10 = scmp.lt.s32.totalorder %s1017_s16, %s1334_s5 }
  0x43   : > { %730 = vmatmul.msk.f32.vlgmr.msra.gmra.mxu0 %vm366_vm0, %v361_v7  ;;  %420 = vmatpush.msra.mxu1 %v397_v8  ;;  %p1024_p11 = scmp.lt.s32.totalorder %s1022_s29, %s1018_s17 }
  0x44   : > { %731 = vmatmul.msk.f32.vlgmr.msra.gmra.mxu1 %vm366_vm0, %v396_v9  ;;  %443 = vmatpush.msra.mxu2 %v426_v17  ;;  %v476_v23 = vld [vmem:[#allocation3] sm:$0xff]  ;;  %p1020_p3 = pnand %p1019_p1, %p1223_p4 }
  0x45   : > { %v501_v40 = vld [vmem:[#allocation5] sm:$0xff]  ;;  %p1025_p12 = por %p1024_p11, %p1023_p10 }
  0x46   : > { %444 = vmatpush.msra.mxu2 %v425_v18  ;;  %v493_v35 = vld [vmem:[#allocation4] sm:$0xff]  ;;  %p1021_p9 = pneg %p1020_p3 }
  0x47   : > { %732 = vmatmul.msk.f32.vlgmr.msra.gmra.mxu2 %vm366_vm0, %v396_v9 }
  0x48   : > { %p1026_p13 = pnand %p1025_p12, %p1021_p9 }
  0xc0   : > { %v387_v10 = vpop.f32.mrf.mxu0 }
  0xc1   : > { %v390_v11 = vmul.f32 0.17677669, %v387_v10  ;;  %v422_v12 = vpop.f32.mrf.mxu1 }
  0xc2   : > { %733 = vmatpush.xpose.msk.msra.mxu3 %vm366_vm0, %v422_v12 }
  0xc3   : > { %391 = vst.msk [vmem:[#allocation2] sm:$0xff] %vm366_vm0, %v390_v11 }
  0xca   : > { %v449_v13 = vld [vmem:[#allocation2] sm:$0xff]  ;;  %v446_v29 = vpop.f32.mrf.mxu2 }
  0xcb   : > { %734 = vmatmul.msk.f32.vlgmr.msra.gmra.mxu3 %vm366_vm0, %v449_v13 }
  0xcc   : > { %526 = vmatpush.msrb.mxu3 %v446_v29 }
 0x14e   : > { %v473_v19 = vpop.f32.mrf.mxu3 }
 0x14f   : > { %v478_v20 = vsel %vm477_vm2, %v473_v19, -inf }
 0x150   : > { %479 = vmax.xlane.f32.xlu0 %v478_v20 }
 0x1c3   : > { %v480_v24 = vpop.xlane.xlu0 %479 }
 0x1c4   : > { %v481_v25 = vmax.f32 %v476_v23, %v480_v24 }
 0x1c6   : > { %v482_v26 = vsub.f32 %v476_v23, %v481_v25  ;;  %533 = vst.msk [vmem:[#allocation3] sm:$0xff] %vm392_vm1, %v481_v25  ;;  %487 = vperm.xlu0 %843, %v481_v25  }
 0x1c8   : > { %v483_v27 = vmul.f32 1.442695, %v482_v26 }
 0x1ca   : > { %846 = vpow2.f32 %v483_v27 }
 0x1d0   : > { %v847_v28 = vpop.eup %846 }
 0x1d1   : > { %504 = vperm.xlu2 %845, %v847_v28   ;;  %v494_v36 = vmul.f32 %v847_v28, %v493_v35 }
 0x22b   : > { %v505_v41 = vpop.permute.xlu2 %504 }
 0x22c   : > { %v507_v42 = vmul.f32 %v505_v41, %v501_v40 }
 0x238   : > { %v488_v30 = vpop.permute.xlu0 %487 }
 0x239   : > { %v490_v31 = vsub.f32 %v473_v19, %v488_v30 }
 0x23b   : > { %v491_v32 = vmul.f32 1.442695, %v490_v31 }
 0x23d   : > { %848 = vpow2.f32 %v491_v32 }
 0x243   : > { %v849_v33 = vpop.eup %848 }
 0x244   : > { %735 = vmatmul.msk.f32.vlgmr.msrb.gmra.mxu3 %vm477_vm2, %v849_v33  ;;  %v495_v34 = vsel %vm477_vm2, %v849_v33, 0.0 }
 0x245   : > { %496 = vadd.xlane.f32.xlu1 %v495_v34 }
 0x2b8   : > { %v497_v37 = vpop.xlane.xlu1 %496 }
 0x2b9   : > { %v498_v38 = vadd.f32 %v497_v37, %v494_v36 }
 0x2bb   : > { %500 = vst.msk [vmem:[#allocation4] sm:$0xff] %vm392_vm1, %v498_v38 }
 0x2c2   : > { %v538_v39 = vld [vmem:[#allocation4] sm:$0xff] }
 0x2c3   : > { %541 = vperm.xlu1 %844, %v538_v39  }
 0x2c7   : > { %v528_v43 = vpop.f32.mrf.mxu3 }
 0x2c8   : > { %v531_v44 = vadd.f32 %v528_v43, %v507_v42 }
 0x2ca   : > { %532 = vst.msk [vmem:[#allocation5] sm:$0xff] %vm366_vm0, %v531_v44 }
 0x2d1   : > { %v537_v55 = vld [vmem:[#allocation5] sm:$0xff] }
 0x335   : > { %v542_v45 = vpop.permute.xlu1 %541 }
 0x336   : > { %850 = vrcp.f32 %v542_v45  ;;  %v555_v49 = vand.u32 2147483648, %v542_v45  ;;  %v553_v51 = vand.u32 2147483647, %v542_v45  ;;  %vm549_vm4 = vweird.f32 %v542_v45 }
 0x338   : > { %v556_v53 = vor.u32 1.1754944e-38, %v555_v49  ;;  %vm554_vm6 = vcmp.eq.f32.partialorder %v553_v51, 8.507059e+37 }
 0x33c   : > { %v851_v46 = vpop.eup %850 }
 0x33d   : > { %v545_v47 = vmul.f32 %v851_v46, %v542_v45  ;;  %vm550_vm3 = vweird.f32 %v851_v46 }
 0x33e   : > { %vm551_vm5 = vmor %vm549_vm4, %vm550_vm3 }
 0x33f   : > { %v546_v48 = vsub.f32 1.0, %v545_v47 }
 0x341   : > { %v547_v50 = vmul.f32 %v851_v46, %v546_v48 }
 0x343   : > { %v548_v52 = vadd.f32 %v851_v46, %v547_v50 }
 0x345   : > { %v552_v54 = vsel %vm551_vm5, %v851_v46, %v548_v52 }
 0x346   : > { %v557_v56 = vsel %vm554_vm6, %v556_v53, %v552_v54 }
 0x347   : > { %v558_v57 = vmul.f32 %v557_v56, %v537_v55 }
 0x349   : > { %559 = vst.msk [vmem:[%s356_s11] sm:$0xff] %vm366_vm0, %v558_v57 }
 0x34a   : > { %1029 = shalt.err (!%p1026_p13)
}
 0x34b   : > { %756 = dma.vmem_to_hbm [thread:$0]  (%p1223_p4), %s575_s12, 128, %s577_s15, %s561_s21  }
 0x34c PF: > { %s588_s30 = sand.u32 1, %s1076_s18   ;;  %p776_p0 = pnand %p718_p6, %p1231_p7 }
 0x34d   : > { %s589_s13 = scalar_lea.sflag [#allocation8], %s588_s30 }
 0x34e   : > { %p777_p2 = pneg %p776_p0 }
 0x350   : > { %1071 = dma.done.wait (%p777_p2), %s589_s13, 128  }
 0x351   : > { %1073 = vsyncadd (%p777_p2), %s589_s13, 4294967168  ;;  %s25_s23 = sadd.s32 1, %s1096_s23   ;;  %s1352_s4 = sld [smem:[#allocation23_spill]] }
 0x352   : > { %p22_p5 = scmp.ge.s32.totalorder %s25_s23, 4   ;;  %s1353_s21 = sld [smem:[#allocation21_spill]] }
 0x353   : > { %s1354_s22 = sld [smem:[#allocation22_spill]]  ;;  %s1355_s18 = smov %s1080_s19 }
 0x354   : > { %s1356_s19 = smov %s1084_s20  ;;  %24 = sbr.rel (!%p22_p5) target bundleno = 13 (0xd), region = 118 }
 0x357   : > { %s1357_s20 = smov %s1352_s4 }
 0x359   :  { %595 = vsyncpa [#allocation7], 1 }
 0x35a   :  { %597 = vsyncpa [#allocation7 + $0x1], 1 }
 0x35b   :  { %598 = vsyncpa [#allocation10], 1 }
 0x35c   :  { %600 = vsyncpa [#allocation10 + $0x1], 1 }
 0x35d   :  { %601 = vsyncpa [#allocation13], 1 }
 0x35e   :  { %602 = vsyncpa [#allocation8], 1 }
 0x35f   :  { %604 = vsyncpa [#allocation8 + $0x1], 1 }

</bundles_post_ra>
